<compile_context>
chip_gen: v7x
topology: tpu7x:2x2x1
jax: 0.10.0
libtpu: 0.0.40
codegen_flags: <defaults>
</compile_context>

<pallas_src>
import numpy as np

import jax
import jax.numpy as jnp
from jax.experimental import pallas as pl
from jax.experimental.pallas import tpu as pltpu


# ---------------------------------------------------------------------------
# Kernel: fused (conv-as-GEMM) + bias + ReLU, output in NCHW flatten order.
# ---------------------------------------------------------------------------
def conv_gemm_relu_kernel(x_ref, w_ref, b_ref, o_ref):
    """x_ref: (TB, K) f32    K = H*W*C  (cast to bf16 in-kernel for the MXU)
       w_ref: (K, N)  bf16   N = 16*8*8 = 1024 (lane-dense, VMEM-resident)
       b_ref: (1, N)  f32
       o_ref: (TB, N) f32 (or bf16)
    """
    x = x_ref[...].astype(jnp.bfloat16)          # in-kernel cast, no HBM pass
    acc = jnp.dot(x, w_ref[...], preferred_element_type=jnp.float32)
    acc = acc + b_ref[...]                        # broadcast (1, N) over rows
    o_ref[...] = jnp.maximum(acc, 0.0).astype(o_ref.dtype)


# ---------------------------------------------------------------------------
# One-time parameter packing (numpy, host side).  Call this once per
# parameter update, NOT per forward call.  Folds permute + im2col + NCHW
# flatten ordering into a tiny (H*W*C x 1024) matrix.
# ---------------------------------------------------------------------------
def pack_conv_params(conv_w, conv_b, *, H=10, W=10, weight_dtype=jnp.bfloat16):
    """conv_w: (16, C, 3, 3) OIHW, conv_b: (16,)
    Returns:
      w_mat: (H*W*C, 16*OH*OW) with
         w_mat[(h*W + w)*C + c, oc*OH*OW + oh*OW + ow] = conv_w[oc, c, h-oh, w-ow]
         (0 where the tap is out of range)
      b_vec: (1, 16*OH*OW) f32, bias replicated per spatial position.
    """
    conv_w = np.asarray(conv_w, dtype=np.float32)
    conv_b = np.asarray(conv_b, dtype=np.float32)
    OC, C, KH, KW = conv_w.shape
    OH, OW = H - KH + 1, W - KW + 1
    K, N = H * W * C, OC * OH * OW

    w_mat = np.zeros((K, N), dtype=np.float32)
    for oh in range(OH):
        for ow in range(OW):
            col0 = oh * OW + ow                      # column oc*OH*OW + col0
            for kh in range(KH):
                for kw in range(KW):
                    h, w = oh + kh, ow + kw
                    for c in range(C):
                        row = (h * W + w) * C + c    # NHWC flatten row index
                        w_mat[row, col0::OH * OW] = conv_w[:, c, kh, kw]

    b_vec = np.repeat(conv_b, OH * OW).reshape(1, N)
    return jnp.asarray(w_mat, dtype=weight_dtype), jnp.asarray(b_vec, jnp.float32)


# ---------------------------------------------------------------------------
# Forward pass wrapper (takes the pre-packed parameters).
# ---------------------------------------------------------------------------
def minatar_forward(x_nhwc, w_mat, b_vec, *, block_rows=512,
                    out_dtype=jnp.float32):
    """x_nhwc : (B, 10, 10, C) float32 — exactly what the PyTorch module gets.
       w_mat  : (H*W*C, 1024) bf16 packed conv weight (pack_conv_params).
       b_vec  : (1, 1024) f32 packed bias.
       returns: (B, 1024) out_dtype, NCHW flatten order (matches nn.Flatten).
    """
    B, H, W, C = x_nhwc.shape
    K, N = w_mat.shape
    assert K == H * W * C, (K, H, W, C)

    # Free reshape (metadata only): native NHWC order, native f32 dtype.
    x_flat = x_nhwc.reshape(B, K)

    # Batch tile: full batch if it fits, else a sublane-aligned tile.  The
    # grid uses cdiv + Pallas' masked partial final block, so no jnp.pad
    # round-trip over the activations for ragged B.
    TB = min(block_rows, B)
    if TB < B:
        TB = max(8, (TB // 8) * 8)
    n_blocks = pl.cdiv(B, TB)

    # Scoped-VMEM limit sized to actual need (+ margin), floored at the v5e
    # default; never request the full physical VMEM (matters on v7x).
    vmem_need = (2 * TB * K * x_flat.dtype.itemsize        # x, double-buffered
                 + 2 * K * N * w_mat.dtype.itemsize        # resident weight
                 + 2 * N * b_vec.dtype.itemsize            # resident bias
                 + 2 * TB * N * np.dtype(out_dtype).itemsize)  # output
    vmem_limit = max(16 * 1024 * 1024, int(vmem_need * 1.25) + (2 << 20))

    # v7x has 2 TensorCores per chip: split the batch loop across them when
    # the grid can actually be split; elsewhere plain "parallel".
    kind = jax.devices()[0].device_kind.lower()
    if ("v7" in kind or "7x" in kind) and n_blocks % 2 == 0:
        batch_sem = pltpu.CORE_PARALLEL
    else:
        batch_sem = "parallel"

    return pl.pallas_call(
        conv_gemm_relu_kernel,
        out_shape=jax.ShapeDtypeStruct((B, N), out_dtype),
        grid=(n_blocks,),
        in_specs=[
            pl.BlockSpec((TB, K), lambda i: (i, 0)),   # activations: stream M
            pl.BlockSpec((K, N), lambda i: (0, 0)),    # packed weight: resident
            pl.BlockSpec((1, N), lambda i: (0, 0)),    # bias: resident
        ],
        out_specs=pl.BlockSpec((TB, N), lambda i: (i, 0)),
        compiler_params=pltpu.CompilerParams(
            dimension_semantics=(batch_sem,),
            vmem_limit_bytes=vmem_limit,
        ),
    )(x_flat, w_mat, b_vec)


# ---------------------------------------------------------------------------
# Pure-JAX reference (lax conv) for correctness checking.  Inputs/weights are
# rounded to bf16 (same as the kernel's MXU inputs), accumulation in f32.
# ---------------------------------------------------------------------------
def _reference_forward(x_nhwc, conv_w, conv_b, compute_dtype=jnp.bfloat16):
    x = jnp.transpose(x_nhwc, (0, 3, 1, 2))
    x = x.astype(compute_dtype).astype(jnp.float32)
    w = conv_w.astype(compute_dtype).astype(jnp.float32)
    y = jax.lax.conv_general_dilated(
        x, w, window_strides=(1, 1), padding="VALID",
        dimension_numbers=("NCHW", "OIHW", "NCHW"),
        precision=jax.lax.Precision.HIGHEST)
    y = y + conv_b.reshape(1, -1, 1, 1).astype(jnp.float32)
    y = jnp.maximum(y, 0.0)
    return y.reshape(y.shape[0], -1)


if __name__ == "__main__":
    B, C = 2, 4                     # batch=2, in_channels=4, MinAtar 10x10 grid
    key = jax.random.PRNGKey(0)
    kx, kw, kb = jax.random.split(key, 3)

    x = jax.random.uniform(kx, (B, 10, 10, C), dtype=jnp.float32)
    conv_w = jax.random.normal(kw, (16, C, 3, 3), dtype=jnp.float32) * 0.1
    conv_b = jax.random.normal(kb, (16,), dtype=jnp.float32) * 0.1

    # One-time parameter packing (hoisted out of the per-call path).
    w_mat, b_vec = pack_conv_params(conv_w, conv_b)

    fwd = jax.jit(minatar_forward)
    out = jax.block_until_ready(fwd(x, w_mat, b_vec))

    # This also serves as the packing-invariant unit test (row/col ordering
    # of w_mat vs NHWC input layout and NCHW flatten order).
    ref = _reference_forward(x, conv_w, conv_b)
    assert out.shape == (B, 1024), out.shape
    assert jnp.allclose(out, ref, atol=2e-3, rtol=2e-3), "mismatch vs reference"

    print("KERNEL_OK")
</pallas_src>

<mosaic_0001>
module attributes {stable_mosaic.version = 11 : i64} {
  func.func @conv_gemm_relu_kernel(%arg0: i32, %arg1: memref<2x400xf32, #tpu.memory_space<vmem>>, %arg2: memref<400x1024xbf16, #tpu.memory_space<vmem>>, %arg3: memref<1x1024xf32, #tpu.memory_space<vmem>>, %arg4: memref<2x1024xf32, #tpu.memory_space<vmem>>) attributes {dimension_semantics = [#tpu.dimension_semantics<parallel>], iteration_bounds = array<i64: 1>, scalar_prefetch = 0 : i64, scratch_operands = 0 : i64, tpu.core_type = #tpu.core_type<tc>, window_params = [{transform_indices = @transform_0, window_bounds = array<i64: 2, 400>}, {pipeline_mode = #tpu.pipeline_mode<synchronous>, transform_indices = @transform_1, window_bounds = array<i64: 400, 1024>}, {pipeline_mode = #tpu.pipeline_mode<synchronous>, transform_indices = @transform_2, window_bounds = array<i64: 1, 1024>}, {transform_indices = @transform_3, window_bounds = array<i64: 2, 1024>}]} {
    %c0 = arith.constant 0 : index
    %c0_0 = arith.constant 0 : index
    %0 = vector.load %arg1[%c0, %c0_0] : memref<2x400xf32, #tpu.memory_space<vmem>>, vector<2x400xf32>
    %1 = arith.truncf %0 : vector<2x400xf32> to vector<2x400xbf16>
    %c0_1 = arith.constant 0 : index
    %c0_2 = arith.constant 0 : index
    %2 = vector.load %arg2[%c0_1, %c0_2] : memref<400x1024xbf16, #tpu.memory_space<vmem>>, vector<400x1024xbf16>
    %cst = arith.constant dense<0.000000e+00> : vector<2x1024xf32>
    %3 = tpu.matmul %1, %2, %cst {dimension_numbers = #tpu.dot_dimension_numbers<[1], [0], [0], [1], [0, 0, 1, 1], [], []>} : vector<2x400xbf16>, vector<400x1024xbf16>, vector<2x1024xf32> -> vector<2x1024xf32>
    %c0_3 = arith.constant 0 : index
    %c0_4 = arith.constant 0 : index
    %4 = vector.load %arg3[%c0_3, %c0_4] : memref<1x1024xf32, #tpu.memory_space<vmem>>, vector<1x1024xf32>
    %5 = vector.broadcast %4 : vector<1x1024xf32> to vector<2x1024xf32>
    %6 = arith.addf %3, %5 : vector<2x1024xf32>
    %cst_5 = arith.constant 0.000000e+00 : f32
    %7 = vector.broadcast %cst_5 : f32 to vector<2x1024xf32>
    %8 = arith.maximumf %6, %7 : vector<2x1024xf32>
    %c0_6 = arith.constant 0 : index
    %c0_7 = arith.constant 0 : index
    %9 = vector.load %arg4[%c0_6, %c0_7] : memref<2x1024xf32, #tpu.memory_space<vmem>>, vector<2x1024xf32>
    tpu.vector_store %arg4[%c0_6, %c0_7], %8 {strides = array<i32>} : memref<2x1024xf32, #tpu.memory_space<vmem>>, vector<2x1024xf32>,
    return
  }
  func.func @transform_0(%arg0: i32) -> (i32, i32) {
    %c0_i32 = arith.constant 0 : i32
    %c0_i32_0 = arith.constant 0 : i32
    return %arg0, %c0_i32 : i32, i32
  }
  func.func @transform_1(%arg0: i32) -> (i32, i32) {
    %c0_i32 = arith.constant 0 : i32
    %c0_i32_0 = arith.constant 0 : i32
    %c0_i32_1 = arith.constant 0 : i32
    return %c0_i32, %c0_i32_0 : i32, i32
  }
  func.func @transform_2(%arg0: i32) -> (i32, i32) {
    %c0_i32 = arith.constant 0 : i32
    %c0_i32_0 = arith.constant 0 : i32
    %c0_i32_1 = arith.constant 0 : i32
    return %c0_i32, %c0_i32_0 : i32, i32
  }
  func.func @transform_3(%arg0: i32) -> (i32, i32) {
    %c0_i32 = arith.constant 0 : i32
    %c0_i32_0 = arith.constant 0 : i32
    return %arg0, %c0_i32 : i32, i32
  }
}

</mosaic_0001>

<bundles_post_ra>
// kernel: minatar_forward.1
= control target key start
LH: loop header
LB: loop body
LE: loop exit
PB: predicated region body
PF: predicated region fallthrough
CT: control target
= control target key end

     0   :  { %8 = vsyncpa [#allocation3], 0  ;;  %s2101_s0 = inlined_call_operand.vmem [shape: f32[2,400], index: 0, kind: input, shape index: {}]   ;;  %s2102_s1 = inlined_call_operand.hbm [shape: bf16[400,1024], index: 1, kind: input, shape index: {}]   ;;  %s2103_s2 = inlined_call_operand.vmem [shape: f32[1,1024], index: 2, kind: input, shape index: {}]   ;;  %s2104_s3 = inlined_call_operand.hbm [shape: f32[2,1024], index: 3, kind: output, shape index: {}]  }
   0x1   :  { %9 = vsyncpa [#allocation4], 0  ;;  %s1982_s12 = smov [#allocation2]   ;;  %s1934_s16 = scalar_lea.hbm %s2102_s1, 25600 }
   0x2   :  { %s17_s13 = sshll.u32 %s1982_s12, 4  ;;  %p1935_p0 = scmp.ne.s32.totalorder %s2102_s1, %s1934_s16  ;;  %s18_s13 = int_to_ptr.vmem [resolvable:$true] %s17_s13 }
   0x3   :  { %p1938_p1 = scmp.lt.u32.totalorder %s1934_s16, %s2102_s1 }
   0x5   :  { %p1940_p2 = pnand %p1938_p1, %p1935_p0 }
   0x7   :  { %1943 = shalt.err (!%p1940_p2)
}
   0x8   :  { %s1944_s21 = scalar_lea.vmem %s18_s13, 25600  ;;  %p1949_p4 = scmp.lt.s32.totalorder %s18_s13, %s18_s13 }
   0x9   :  { %p1945_p3 = scmp.ne.s32.totalorder %s18_s13, %s1944_s21  ;;  %p1950_p5 = scmp.lt.s32.totalorder %s1944_s21, %s1944_s21 }
   0xb   :  { %p1951_p6 = por %p1950_p5, %p1949_p4 }
   0xd   :  { %p1952_p7 = pnand %p1951_p6, %p1945_p3 }
   0xf   :  { %1955 = shalt.err (!%p1952_p7)
}
  0x10   :  { %s1983_s22 = smov 512   ;;  %s1984_s23 = smov 32  }
  0x11   :  { %23 = dma.hbm_to_vmem [thread:$0]  %s2102_s1, 25600, %s18_s13, [#allocation3], %s1983_s22, %s1983_s22, %s1984_s23  }
  0x12   :  { %1978 = dma.done.wait [#allocation3], 25600  }
  0x13   :  { %1979 = vsyncadd [#allocation3], 4294941696  ;;  %v57_v0 = vld [vmem:[#allocation2] sm:$0xff]  ;;  %v58_v2 = vld [vmem:[#allocation2 + $0x8] sm:$0xff]  ;;  %v1985_v32 = vmov 1983009808   ;;  %v36_v34 = vlaneseq }
  0x14   :  { %v61_v1 = vld [vmem:[#allocation2 + $0x20] sm:$0xff]  ;;  %v62_v4 = vld [vmem:[#allocation2 + $0x28] sm:$0xff]  ;;  %v34_v33 = vunpack.c.l.s4 %v1985_v32  ;;  %vm1299_vm0 = vcmask 130048  }
  0x15   :  { %v1701_v3 = vcombine.high %v57_v0, %v61_v1  ;;  %v1700_v5 = vcombine.low %v57_v0, %v61_v1  ;;  %v65_v6 = vld [vmem:[#allocation2 + $0x40] sm:$0xff]  ;;  %v1703_v8 = vcombine.high %v58_v2, %v62_v4  ;;  %v1702_v9 = vcombine.low %v58_v2, %v62_v4  ;;  %v66_v11 = vld [vmem:[#allocation2 + $0x48] sm:$0xff] }
  0x16   :  { %v69_v7 = vld [vmem:[#allocation2 + $0x60] sm:$0xff]  ;;  %v70_v12 = vld [vmem:[#allocation2 + $0x68] sm:$0xff]  ;;  %v35_v43 = vunpack.c.0.s8 %v34_v33  ;;  %v2019_v44 = vshrl.u32 %v36_v34, 7 }
  0x17   :  { %v1709_v10 = vcombine.high %v65_v6, %v69_v7  ;;  %v73_v13 = vld [vmem:[#allocation2 + $0x80] sm:$0xff]  ;;  %1303 = vmatprep.subr.bf16.mxu0 %v1701_v3  ;;  %v1711_v14 = vcombine.high %v66_v11, %v70_v12  ;;  %v74_v16 = vld [vmem:[#allocation2 + $0x88] sm:$0xff]  ;;  %1385 = vmatprep.subr.bf16.mxu1 %v1703_v8  ;;  %v1708_v18 = vcombine.low %v65_v6, %v69_v7 }
  0x18   :  { %v77_v15 = vld [vmem:[#allocation2 + $0xa0] sm:$0xff]  ;;  %v78_v17 = vld [vmem:[#allocation2 + $0xa8] sm:$0xff]  ;;  %1304 = vmatpush1.bf16.msra.mxu0 %v1700_v5  ;;  %1386 = vmatpush1.bf16.msra.mxu1 %v1702_v9  ;;  %v1710_v19 = vcombine.low %v66_v11, %v70_v12  ;;  %v2022_v53 = vsub.s32 %v35_v43, %v2019_v44 }
  0x19   :  { %1305 = vmatprep.subr.bf16.mxu0 %v1709_v10  ;;  %v1717_v20 = vcombine.high %v73_v13, %v77_v15  ;;  %1387 = vmatprep.subr.bf16.mxu1 %v1711_v14  ;;  %v1719_v21 = vcombine.high %v74_v16, %v78_v17  ;;  %v81_v22 = vld [vmem:[#allocation2 + $0xc0] sm:$0xff]  ;;  %v82_v24 = vld [vmem:[#allocation2 + $0xc8] sm:$0xff]  ;;  %v1716_v26 = vcombine.low %v73_v13, %v77_v15 }
  0x1a   :  { %v85_v23 = vld [vmem:[#allocation2 + $0xe0] sm:$0xff]  ;;  %v86_v25 = vld [vmem:[#allocation2 + $0xe8] sm:$0xff]  ;;  %v1718_v27 = vcombine.low %v74_v16, %v78_v17 }
  0x1b   :  { %v1725_v28 = vcombine.high %v81_v22, %v85_v23  ;;  %v1727_v29 = vcombine.high %v82_v24, %v86_v25  ;;  %v89_v30 = vld [vmem:[#allocation2 + $0x100] sm:$0xff]  ;;  %v90_v35 = vld [vmem:[#allocation2 + $0x108] sm:$0xff]  ;;  %v1724_v37 = vcombine.low %v81_v22, %v85_v23  ;;  %v1726_v38 = vcombine.low %v82_v24, %v86_v25 }
  0x1c   :  { %1306 = vmatpush1.bf16.msra.mxu0 %v1708_v18  ;;  %1388 = vmatpush1.bf16.msra.mxu1 %v1710_v19  ;;  %v93_v31 = vld [vmem:[#allocation2 + $0x120] sm:$0xff]  ;;  %v94_v36 = vld [vmem:[#allocation2 + $0x128] sm:$0xff] }
  0x1d   :  { %1307 = vmatprep.subr.bf16.mxu0 %v1717_v20  ;;  %1389 = vmatprep.subr.bf16.mxu1 %v1719_v21  ;;  %v1733_v39 = vcombine.high %v89_v30, %v93_v31  ;;  %v1735_v40 = vcombine.high %v90_v35, %v94_v36  ;;  %v97_v41 = vld [vmem:[#allocation2 + $0x140] sm:$0xff]  ;;  %v98_v45 = vld [vmem:[#allocation2 + $0x148] sm:$0xff]  ;;  %v1732_v47 = vcombine.low %v89_v30, %v93_v31 }
  0x1e   :  { %v101_v42 = vld [vmem:[#allocation2 + $0x160] sm:$0xff]  ;;  %v102_v46 = vld [vmem:[#allocation2 + $0x168] sm:$0xff]  ;;  %v1734_v48 = vcombine.low %v90_v35, %v94_v36 }
  0x1f   :  { %v1741_v49 = vcombine.high %v97_v41, %v101_v42  ;;  %v1743_v50 = vcombine.high %v98_v45, %v102_v46  ;;  %v105_v51 = vld [vmem:[#allocation2 + $0x180] sm:$0xff]  ;;  %v106_v54 = vld [vmem:[#allocation2 + $0x188] sm:$0xff]  ;;  %v1740_v56 = vcombine.low %v97_v41, %v101_v42  ;;  %v1742_v57 = vcombine.low %v98_v45, %v102_v46 }
  0x20   :  { %1308 = vmatpush1.bf16.msra.mxu0 %v1716_v26  ;;  %1390 = vmatpush1.bf16.msra.mxu1 %v1718_v27  ;;  %v109_v52 = vld [vmem:[#allocation2 + $0x1a0] sm:$0xff]  ;;  %v110_v55 = vld [vmem:[#allocation2 + $0x1a8] sm:$0xff] }
  0x21   :  { %1309 = vmatprep.subr.bf16.mxu0 %v1725_v28  ;;  %1391 = vmatprep.subr.bf16.mxu1 %v1727_v29  ;;  %v1749_v58 = vcombine.high %v105_v51, %v109_v52  ;;  %v2027_v59 = vld [vmem:[%s2101_s0] sm:$0xff]  ;;  %v1751_v60 = vcombine.high %v106_v54, %v110_v55  ;;  %v114_v0 = vld [vmem:[#allocation2 + $0x1c8] sm:$0xff]  ;;  %v1748_v2 = vcombine.low %v105_v51, %v109_v52 }
  0x22   :  { %v113_v61 = vld [vmem:[#allocation2 + $0x1c0] sm:$0xff]  ;;  %v2031_v63 = vrot.slane %v2027_v59, %v2022_v53  ;;  %v118_v1 = vld [vmem:[#allocation2 + $0x1e8] sm:$0xff]  ;;  %v1750_v4 = vcombine.low %v106_v54, %v110_v55 }
  0x23   :  { %v117_v62 = vld [vmem:[#allocation2 + $0x1e0] sm:$0xff]  ;;  %v1759_v6 = vcombine.high %v114_v0, %v118_v1  ;;  %v122_v10 = vld [vmem:[#allocation2 + $0x208] sm:$0xff]  ;;  %v1758_v13 = vcombine.low %v114_v0, %v118_v1 }
  0x24   :  { %1310 = vmatpush1.bf16.msra.mxu0 %v1724_v37  ;;  %1392 = vmatpush1.bf16.msra.mxu1 %v1726_v38  ;;  %v47_v3 = vcombine.high %v2031_v63, %v2031_v63  ;;  %v1757_v5 = vcombine.high %v113_v61, %v117_v62  ;;  %v121_v7 = vld [vmem:[#allocation2 + $0x200] sm:$0xff]  ;;  %v126_v11 = vld [vmem:[#allocation2 + $0x228] sm:$0xff]  ;;  %v1756_v12 = vcombine.low %v113_v61, %v117_v62 }
  0x25   :  { %1311 = vmatprep.subr.bf16.mxu0 %v1733_v39  ;;  %1393 = vmatprep.subr.bf16.mxu1 %v1735_v40  ;;  %v125_v8 = vld [vmem:[#allocation2 + $0x220] sm:$0xff]  ;;  %v1767_v15 = vcombine.high %v122_v10, %v126_v11  ;;  %v130_v18 = vld [vmem:[#allocation2 + $0x248] sm:$0xff]  ;;  %v1766_v21 = vcombine.low %v122_v10, %v126_v11 }
  0x26   :  { %v2035_v9 = vpack.c.bf16 %v47_v3, %v47_v3  ;;  %v1765_v14 = vcombine.high %v121_v7, %v125_v8  ;;  %v129_v16 = vld [vmem:[#allocation2 + $0x240] sm:$0xff]  ;;  %v134_v19 = vld [vmem:[#allocation2 + $0x268] sm:$0xff]  ;;  %v1764_v20 = vcombine.low %v121_v7, %v125_v8 }
  0x27   :  { %v133_v17 = vld [vmem:[#allocation2 + $0x260] sm:$0xff]  ;;  %v1775_v23 = vcombine.high %v130_v18, %v134_v19  ;;  %v138_v26 = vld [vmem:[#allocation2 + $0x288] sm:$0xff]  ;;  %v1774_v29 = vcombine.low %v130_v18, %v134_v19 }
  0x28   :  { %1312 = vmatpush1.bf16.msra.mxu0 %v1732_v47  ;;  %1394 = vmatpush1.bf16.msra.mxu1 %v1734_v48  ;;  %v1773_v22 = vcombine.high %v129_v16, %v133_v17  ;;  %v137_v24 = vld [vmem:[#allocation2 + $0x280] sm:$0xff]  ;;  %v142_v27 = vld [vmem:[#allocation2 + $0x2a8] sm:$0xff]  ;;  %v1772_v28 = vcombine.low %v129_v16, %v133_v17 }
  0x29   :  { %1313 = vmatprep.subr.bf16.mxu0 %v1741_v49  ;;  %1395 = vmatprep.subr.bf16.mxu1 %v1743_v50  ;;  %v141_v25 = vld [vmem:[#allocation2 + $0x2a0] sm:$0xff]  ;;  %v1783_v31 = vcombine.high %v138_v26, %v142_v27  ;;  %v146_v34 = vld [vmem:[#allocation2 + $0x2c8] sm:$0xff]  ;;  %v1782_v37 = vcombine.low %v138_v26, %v142_v27 }
  0x2a   :  { %1335 = vmatprep.mubr.bf16.mxu0 %v2035_v9  ;;  %1417 = vmatprep.mubr.bf16.mxu1 %v2035_v9  ;;  %v1781_v30 = vcombine.high %v137_v24, %v141_v25  ;;  %v145_v32 = vld [vmem:[#allocation2 + $0x2c0] sm:$0xff]  ;;  %v150_v35 = vld [vmem:[#allocation2 + $0x2e8] sm:$0xff]  ;;  %v1780_v36 = vcombine.low %v137_v24, %v141_v25  ;;  %v2048_v25 = vpack.c.bf16 %v2031_v63, %v2031_v63 }
  0x2b   :  { %v149_v33 = vld [vmem:[#allocation2 + $0x2e0] sm:$0xff]  ;;  %v1791_v39 = vcombine.high %v146_v34, %v150_v35  ;;  %v154_v42 = vld [vmem:[#allocation2 + $0x308] sm:$0xff]  ;;  %v1790_v46 = vcombine.low %v146_v34, %v150_v35 }
  0x2c   :  { %1314 = vmatpush1.bf16.msra.mxu0 %v1740_v56  ;;  %1396 = vmatpush1.bf16.msra.mxu1 %v1742_v57  ;;  %v1789_v38 = vcombine.high %v145_v32, %v149_v33  ;;  %v153_v40 = vld [vmem:[#allocation2 + $0x300] sm:$0xff]  ;;  %v158_v43 = vld [vmem:[#allocation2 + $0x328] sm:$0xff]  ;;  %v1788_v45 = vcombine.low %v145_v32, %v149_v33 }
  0x2d   :  { %1315 = vmatprep.subr.bf16.mxu0 %v1749_v58  ;;  %1397 = vmatprep.subr.bf16.mxu1 %v1751_v60  ;;  %v157_v41 = vld [vmem:[#allocation2 + $0x320] sm:$0xff]  ;;  %v1799_v48 = vcombine.high %v154_v42, %v158_v43  ;;  %v162_v51 = vld [vmem:[#allocation2 + $0x348] sm:$0xff]  ;;  %v1798_v55 = vcombine.low %v154_v42, %v158_v43 }
  0x2e   :  { %v1797_v47 = vcombine.high %v153_v40, %v157_v41  ;;  %v161_v49 = vld [vmem:[#allocation2 + $0x340] sm:$0xff]  ;;  %v166_v52 = vld [vmem:[#allocation2 + $0x368] sm:$0xff]  ;;  %v1796_v54 = vcombine.low %v153_v40, %v157_v41 }
  0x2f   :  { %v165_v50 = vld [vmem:[#allocation2 + $0x360] sm:$0xff]  ;;  %v1807_v57 = vcombine.high %v162_v51, %v166_v52  ;;  %v170_v61 = vld [vmem:[#allocation2 + $0x388] sm:$0xff]  ;;  %v1806_v1 = vcombine.low %v162_v51, %v166_v52 }
  0x30   :  { %1316 = vmatpush1.bf16.msra.mxu0 %v1748_v2  ;;  %1398 = vmatpush1.bf16.msra.mxu1 %v1750_v4  ;;  %v1805_v56 = vcombine.high %v161_v49, %v165_v50  ;;  %v169_v58 = vld [vmem:[#allocation2 + $0x380] sm:$0xff]  ;;  %v174_v62 = vld [vmem:[#allocation2 + $0x3a8] sm:$0xff]  ;;  %v1804_v0 = vcombine.low %v161_v49, %v165_v50 }
  0x31   :  { %1317 = vmatprep.subr.bf16.mxu0 %v1757_v5  ;;  %1399 = vmatprep.subr.bf16.mxu1 %v1759_v6  ;;  %v173_v60 = vld [vmem:[#allocation2 + $0x3a0] sm:$0xff]  ;;  %v1815_v3 = vcombine.high %v170_v61, %v174_v62  ;;  %v32_v6 = vcombine.high %v2027_v59, %v2027_v59  ;;  %v178_v7 = vld [vmem:[#allocation2 + $0x3c8] sm:$0xff]  ;;  %v1814_v11 = vcombine.low %v170_v61, %v174_v62 }
  0x32   :  { %v1813_v2 = vcombine.high %v169_v58, %v173_v60  ;;  %v177_v4 = vld [vmem:[#allocation2 + $0x3c0] sm:$0xff]  ;;  %v182_v8 = vld [vmem:[#allocation2 + $0x3e8] sm:$0xff]  ;;  %v1812_v10 = vcombine.low %v169_v58, %v173_v60 }
  0x33   :  { %v181_v5 = vld [vmem:[#allocation2 + $0x3e0] sm:$0xff]  ;;  %v2042_v16 = vrot.slane %v32_v6, %v2022_v53  ;;  %v186_v17 = vld [vmem:[#allocation2 + $0x408] sm:$0xff]  ;;  %v1822_v59 = vcombine.low %v178_v7, %v182_v8 }
  0x34   :  { %1318 = vmatpush1.bf16.msra.mxu0 %v1756_v12  ;;  %1400 = vmatpush1.bf16.msra.mxu1 %v1758_v13  ;;  %v1821_v12 = vcombine.high %v177_v4, %v181_v5  ;;  %v1823_v13 = vcombine.high %v178_v7, %v182_v8  ;;  %v190_v18 = vld [vmem:[#allocation2 + $0x428] sm:$0xff]  ;;  %v1820_v19 = vcombine.low %v177_v4, %v181_v5  ;;  %v201_v32 = vld [vmem:[#allocation2 + $0x480] sm:$0xff] }
  0x35   :  { %1319 = vmatprep.subr.bf16.mxu0 %v1765_v14  ;;  %1401 = vmatprep.subr.bf16.mxu1 %v1767_v15  ;;  %v185_v14 = vld [vmem:[#allocation2 + $0x400] sm:$0xff]  ;;  %v48_v24 = vcombine.high %v2042_v16, %v2042_v16  ;;  %v194_v26 = vld [vmem:[#allocation2 + $0x448] sm:$0xff] }
  0x36   :  { %v189_v15 = vld [vmem:[#allocation2 + $0x420] sm:$0xff]  ;;  %v198_v27 = vld [vmem:[#allocation2 + $0x468] sm:$0xff] }
  0x37   :  { %v205_v33 = vld [vmem:[#allocation2 + $0x4a0] sm:$0xff]  ;;  %v2050_v34 = vpack.c.bf16 %v48_v24, %v48_v24  ;;  %v202_v35 = vld [vmem:[#allocation2 + $0x488] sm:$0xff] }
  0x38   :  { %1320 = vmatpush1.bf16.msra.mxu0 %v1764_v20  ;;  %1402 = vmatpush1.bf16.msra.mxu1 %v1766_v21  ;;  %v1829_v20 = vcombine.high %v185_v14, %v189_v15  ;;  %v1831_v21 = vcombine.high %v186_v17, %v190_v18  ;;  %v209_v40 = vld [vmem:[#allocation2 + $0x4c0] sm:$0xff]  ;;  %v210_v42 = vld [vmem:[#allocation2 + $0x4c8] sm:$0xff] }
  0x39   :  { %1321 = vmatprep.subr.bf16.mxu0 %v1773_v22  ;;  %1403 = vmatprep.subr.bf16.mxu1 %v1775_v23  ;;  %v193_v22 = vld [vmem:[#allocation2 + $0x440] sm:$0xff]  ;;  %v214_v43 = vld [vmem:[#allocation2 + $0x4e8] sm:$0xff] }
  0x3a   :  { %v197_v23 = vld [vmem:[#allocation2 + $0x460] sm:$0xff]  ;;  %v218_v51 = vld [vmem:[#allocation2 + $0x508] sm:$0xff] }
  0x3b   :  { %v1836_v63 = vcombine.low %v193_v22, %v197_v23  ;;  %v213_v41 = vld [vmem:[#allocation2 + $0x4e0] sm:$0xff]  ;;  %v222_v52 = vld [vmem:[#allocation2 + $0x528] sm:$0xff] }
  0x3c   :  { %1322 = vmatpush1.bf16.msra.mxu0 %v1772_v28  ;;  %1404 = vmatpush1.bf16.msra.mxu1 %v1774_v29  ;;  %v1828_v28 = vcombine.low %v185_v14, %v189_v15  ;;  %v1830_v29 = vcombine.low %v186_v17, %v190_v18  ;;  %v217_v49 = vld [vmem:[#allocation2 + $0x500] sm:$0xff]  ;;  %v226_v61 = vld [vmem:[#allocation2 + $0x548] sm:$0xff] }
  0x3d   :  { %1323 = vmatprep.subr.bf16.mxu0 %v1781_v30  ;;  %1405 = vmatprep.subr.bf16.mxu1 %v1783_v31  ;;  %v1837_v30 = vcombine.high %v193_v22, %v197_v23  ;;  %v1839_v31 = vcombine.high %v194_v26, %v198_v27  ;;  %v221_v50 = vld [vmem:[#allocation2 + $0x520] sm:$0xff]  ;;  %v230_v62 = vld [vmem:[#allocation2 + $0x568] sm:$0xff] }
  0x3e   :  { %v225_v58 = vld [vmem:[#allocation2 + $0x540] sm:$0xff]  ;;  %v234_v6 = vld [vmem:[#allocation2 + $0x588] sm:$0xff] }
  0x3f   :  { %v229_v60 = vld [vmem:[#allocation2 + $0x560] sm:$0xff]  ;;  %v238_v7 = vld [vmem:[#allocation2 + $0x5a8] sm:$0xff] }
  0x40   :  { %1324 = vmatpush1.bf16.msra.mxu0 %v1780_v36  ;;  %1406 = vmatpush1.bf16.msra.mxu1 %v1782_v37  ;;  %v206_v36 = vld [vmem:[#allocation2 + $0x4a8] sm:$0xff]  ;;  %v1838_v37 = vcombine.low %v194_v26, %v198_v27  ;;  %v233_v4 = vld [vmem:[#allocation2 + $0x580] sm:$0xff]  ;;  %v1868_v8 = vcombine.low %v225_v58, %v229_v60 }
  0x41   :  { %1325 = vmatprep.subr.bf16.mxu0 %v1789_v38  ;;  %1407 = vmatprep.subr.bf16.mxu1 %v1791_v39  ;;  %v1845_v38 = vcombine.high %v201_v32, %v205_v33  ;;  %v1847_v39 = vcombine.high %v202_v35, %v206_v36  ;;  %v237_v5 = vld [vmem:[#allocation2 + $0x5a0] sm:$0xff]  ;;  %v242_v15 = vld [vmem:[#allocation2 + $0x5c8] sm:$0xff] }
  0x42   :  { %v245_v14 = vld [vmem:[#allocation2 + $0x5e0] sm:$0xff]  ;;  %v246_v17 = vld [vmem:[#allocation2 + $0x5e8] sm:$0xff]  ;;  %v1876_v18 = vcombine.low %v233_v4, %v237_v5 }
  0x43   :  { %v253_v22 = vld [vmem:[#allocation2 + $0x620] sm:$0xff]  ;;  %v250_v23 = vld [vmem:[#allocation2 + $0x608] sm:$0xff]  ;;  %v1886_v27 = vcombine.low %v242_v15, %v246_v17 }
  0x44   :  { %1326 = vmatpush1.bf16.msra.mxu0 %v1788_v45  ;;  %1408 = vmatpush1.bf16.msra.mxu1 %v1790_v46  ;;  %v1844_v45 = vcombine.low %v201_v32, %v205_v33  ;;  %v1846_v46 = vcombine.low %v202_v35, %v206_v36  ;;  %v254_v24 = vld [vmem:[#allocation2 + $0x628] sm:$0xff]  ;;  %v60_v32 = vld [vmem:[#allocation2 + $0x18] sm:$0xff] }
  0x45   :  { %1327 = vmatprep.subr.bf16.mxu0 %v1797_v47  ;;  %1409 = vmatprep.subr.bf16.mxu1 %v1799_v48  ;;  %v1853_v47 = vcombine.high %v209_v40, %v213_v41  ;;  %v1855_v48 = vcombine.high %v210_v42, %v214_v43  ;;  %v64_v33 = vld [vmem:[#allocation2 + $0x38] sm:$0xff]  ;;  %v1894_v36 = vcombine.low %v250_v23, %v254_v24 }
  0x48   :  { %1328 = vmatpush1.bf16.msra.mxu0 %v1796_v54  ;;  %1410 = vmatpush1.bf16.msra.mxu1 %v1798_v55  ;;  %v1852_v54 = vcombine.low %v209_v40, %v213_v41  ;;  %v1854_v55 = vcombine.low %v210_v42, %v214_v43  ;;  %v2060_v40 = vpack.c.bf16 %v2042_v16, %v2042_v16  ;;  %v68_v41 = vld [vmem:[#allocation2 + $0x58] sm:$0xff] }
  0x49   :  { %1329 = vmatprep.subr.bf16.mxu0 %v1805_v56  ;;  %1411 = vmatprep.subr.bf16.mxu1 %v1807_v57  ;;  %v1861_v56 = vcombine.high %v217_v49, %v221_v50  ;;  %v1863_v57 = vcombine.high %v218_v51, %v222_v52  ;;  %v72_v42 = vld [vmem:[#allocation2 + $0x78] sm:$0xff] }
  0x4c   :  { %1330 = vmatpush1.bf16.msra.mxu0 %v1804_v0  ;;  %1412 = vmatpush1.bf16.msra.mxu1 %v1806_v1  ;;  %v1860_v0 = vcombine.low %v217_v49, %v221_v50  ;;  %v1862_v1 = vcombine.low %v218_v51, %v222_v52  ;;  %v79_v49 = vld [vmem:[#allocation2 + $0xb0] sm:$0xff]  ;;  %v76_v50 = vld [vmem:[#allocation2 + $0x98] sm:$0xff]  ;;  %v1714_v52 = vcombine.low %v68_v41, %v72_v42 }
  0x4d   :  { %1331 = vmatprep.subr.bf16.mxu0 %v1813_v2  ;;  %1413 = vmatprep.subr.bf16.mxu1 %v1815_v3  ;;  %v1869_v2 = vcombine.high %v225_v58, %v229_v60  ;;  %v1871_v3 = vcombine.high %v226_v61, %v230_v62  ;;  %v80_v51 = vld [vmem:[#allocation2 + $0xb8] sm:$0xff] }
  0x4e   :  { %v84_v58 = vld [vmem:[#allocation2 + $0xd8] sm:$0xff] }
  0x4f   :  { %v88_v60 = vld [vmem:[#allocation2 + $0xf8] sm:$0xff] }
  0x50   :  { %1332 = vmatpush1.bf16.msra.mxu0 %v1812_v10  ;;  %1414 = vmatpush1.bf16.msra.mxu1 %v1814_v11  ;;  %v1870_v10 = vcombine.low %v226_v61, %v230_v62  ;;  %v1877_v11 = vcombine.high %v233_v4, %v237_v5  ;;  %v1722_v62 = vcombine.low %v76_v50, %v80_v51  ;;  %v92_v4 = vld [vmem:[#allocation2 + $0x118] sm:$0xff] }
  0x51   :  { %1333 = vmatprep.subr.bf16.mxu0 %v1821_v12  ;;  %1415 = vmatprep.subr.bf16.mxu1 %v1823_v13  ;;  %v1879_v12 = vcombine.high %v234_v6, %v238_v7  ;;  %v241_v13 = vld [vmem:[#allocation2 + $0x5c0] sm:$0xff]  ;;  %v96_v5 = vld [vmem:[#allocation2 + $0x138] sm:$0xff] }
  0x52   :  { %v1884_v26 = vcombine.low %v241_v13, %v245_v14 }
  0x54   :  { %1334 = vmatpush1.bf16.msra.mxu0 %v1820_v19  ;;  %1416 = vmatpush1.bf16.msra.mxu1 %v1822_v59  ;;  %v1878_v19 = vcombine.low %v234_v6, %v238_v7  ;;  %v1885_v59 = vcombine.high %v241_v13, %v245_v14  ;;  %v1730_v7 = vcombine.low %v84_v58, %v88_v60  ;;  %v104_v13 = vld [vmem:[#allocation2 + $0x178] sm:$0xff] }
  0x55   :  { %1344 = vmatprep.subr.bf16.mxu0 %v1829_v20  ;;  %1426 = vmatprep.subr.bf16.mxu1 %v1831_v21  ;;  %v1887_v20 = vcombine.high %v242_v15, %v246_v17  ;;  %v249_v21 = vld [vmem:[#allocation2 + $0x600] sm:$0xff]  ;;  %v1738_v15 = vcombine.low %v92_v4, %v96_v5 }
  0x56   :  { %v1892_v35 = vcombine.low %v249_v21, %v253_v22 }
  0x57   :  { %1336 = vmatmul.mubr.bf16.vlgmr.msra.gmra.mrb[0].mxu0 %v2048_v25  ;;  %1418 = vmatmul.mubr.bf16.vlgmr.msra.gmra.mrb[0].mxu1 %v2048_v25 }
  0x58   :  { %1345 = vmatpush1.bf16.msra.mxu0 %v1828_v28  ;;  %1427 = vmatpush1.bf16.msra.mxu1 %v1830_v29  ;;  %v1893_v28 = vcombine.high %v249_v21, %v253_v22  ;;  %v1895_v29 = vcombine.high %v250_v23, %v254_v24  ;;  %v112_v21 = vld [vmem:[#allocation2 + $0x1b8] sm:$0xff] }
  0x59   :  { %1346 = vmatprep.subr.bf16.mxu0 %v1837_v30  ;;  %1428 = vmatprep.subr.bf16.mxu1 %v1839_v31  ;;  %v59_v30 = vld [vmem:[#allocation2 + $0x10] sm:$0xff] }
  0x5a   :  { %1900 = vmatprep.mubr.msk.bf16.mxu0 %vm1299_vm0, %v2050_v34  ;;  %1901 = vmatprep.mubr.msk.bf16.mxu1 %vm1299_vm0, %v2050_v34  ;;  %v63_v31 = vld [vmem:[#allocation2 + $0x30] sm:$0xff] }
  0x5b   :  { %v1704_v43 = vcombine.low %v59_v30, %v63_v31 }
  0x5c   :  { %1347 = vmatpush1.bf16.msra.mxu0 %v1836_v63  ;;  %1429 = vmatpush1.bf16.msra.mxu1 %v1838_v37  ;;  %v1705_v63 = vcombine.high %v59_v30, %v63_v31  ;;  %v1707_v37 = vcombine.high %v60_v32, %v64_v33  ;;  %v120_v30 = vld [vmem:[#allocation2 + $0x1f8] sm:$0xff] }
  0x5d   :  { %1348 = vmatprep.subr.bf16.mxu0 %v1845_v38  ;;  %1430 = vmatprep.subr.bf16.mxu1 %v1847_v39  ;;  %v67_v38 = vld [vmem:[#allocation2 + $0x50] sm:$0xff] }
  0x5e   :  { %v71_v39 = vld [vmem:[#allocation2 + $0x70] sm:$0xff] }
  0x5f   :  { %v1712_v16 = vcombine.low %v67_v38, %v71_v39 }
  0x60   :  { %1349 = vmatpush1.bf16.msra.mxu0 %v1844_v45  ;;  %1431 = vmatpush1.bf16.msra.mxu1 %v1846_v46  ;;  %v1706_v45 = vcombine.low %v60_v32, %v64_v33  ;;  %v1713_v46 = vcombine.high %v67_v38, %v71_v39  ;;  %v128_v38 = vld [vmem:[#allocation2 + $0x238] sm:$0xff] }
  0x61   :  { %1350 = vmatprep.subr.bf16.mxu0 %v1853_v47  ;;  %1432 = vmatprep.subr.bf16.mxu1 %v1855_v48  ;;  %v1715_v47 = vcombine.high %v68_v41, %v72_v42  ;;  %v75_v48 = vld [vmem:[#allocation2 + $0x90] sm:$0xff] }
  0x62   :  { %v1720_v61 = vcombine.low %v75_v48, %v79_v49 }
  0x64   :  { %1351 = vmatpush1.bf16.msra.mxu0 %v1852_v54  ;;  %1433 = vmatpush1.bf16.msra.mxu1 %v1854_v55  ;;  %v1721_v54 = vcombine.high %v75_v48, %v79_v49  ;;  %v1723_v55 = vcombine.high %v76_v50, %v80_v51  ;;  %v136_v48 = vld [vmem:[#allocation2 + $0x278] sm:$0xff] }
  0x65   :  { %1352 = vmatprep.subr.bf16.mxu0 %v1861_v56  ;;  %1434 = vmatprep.subr.bf16.mxu1 %v1863_v57  ;;  %v83_v56 = vld [vmem:[#allocation2 + $0xd0] sm:$0xff] }
  0x66   :  { %v87_v57 = vld [vmem:[#allocation2 + $0xf0] sm:$0xff] }
  0x67   :  { %v1728_v6 = vcombine.low %v83_v56, %v87_v57 }
  0x68   :  { %1353 = vmatpush1.bf16.msra.mxu0 %v1860_v0  ;;  %1435 = vmatpush1.bf16.msra.mxu1 %v1862_v1  ;;  %v1729_v0 = vcombine.high %v83_v56, %v87_v57  ;;  %v1731_v1 = vcombine.high %v84_v58, %v88_v60  ;;  %v144_v56 = vld [vmem:[#allocation2 + $0x2b8] sm:$0xff] }
  0x69   :  { %1354 = vmatprep.subr.bf16.mxu0 %v1869_v2  ;;  %1436 = vmatprep.subr.bf16.mxu1 %v1871_v3  ;;  %v91_v2 = vld [vmem:[#allocation2 + $0x110] sm:$0xff] }
  0x6a   :  { %v95_v3 = vld [vmem:[#allocation2 + $0x130] sm:$0xff] }
  0x6b   :  { %v1736_v14 = vcombine.low %v91_v2, %v95_v3 }
  0x6c   :  { %1355 = vmatpush1.bf16.msra.mxu0 %v1868_v8  ;;  %1437 = vmatpush1.bf16.msra.mxu1 %v1870_v10  ;;  %v1737_v8 = vcombine.high %v91_v2, %v95_v3  ;;  %v99_v10 = vld [vmem:[#allocation2 + $0x150] sm:$0xff]  ;;  %v152_v2 = vld [vmem:[#allocation2 + $0x2f8] sm:$0xff] }
  0x6d   :  { %1356 = vmatprep.subr.bf16.mxu0 %v1877_v11  ;;  %1438 = vmatprep.subr.bf16.mxu1 %v1879_v12  ;;  %v103_v11 = vld [vmem:[#allocation2 + $0x170] sm:$0xff]  ;;  %v100_v12 = vld [vmem:[#allocation2 + $0x158] sm:$0xff] }
  0x6e   :  { %v1745_v17 = vcombine.high %v99_v10, %v103_v11  ;;  %v1744_v22 = vcombine.low %v99_v10, %v103_v11  ;;  %v1746_v23 = vcombine.low %v100_v12, %v104_v13  ;;  %v160_v10 = vld [vmem:[#allocation2 + $0x338] sm:$0xff] }
  0x70   :  { %1357 = vmatpush1.bf16.msra.mxu0 %v1876_v18  ;;  %1439 = vmatpush1.bf16.msra.mxu1 %v1878_v19  ;;  %v1747_v18 = vcombine.high %v100_v12, %v104_v13  ;;  %v107_v19 = vld [vmem:[#allocation2 + $0x190] sm:$0xff] }
  0x71   :  { %1358 = vmatprep.subr.bf16.mxu0 %v1885_v59  ;;  %1440 = vmatprep.subr.bf16.mxu1 %v1887_v20  ;;  %v111_v59 = vld [vmem:[#allocation2 + $0x1b0] sm:$0xff]  ;;  %v108_v20 = vld [vmem:[#allocation2 + $0x198] sm:$0xff] }
  0x72   :  { %v1753_v24 = vcombine.high %v107_v19, %v111_v59  ;;  %v1752_v31 = vcombine.low %v107_v19, %v111_v59  ;;  %v1754_v32 = vcombine.low %v108_v20, %v112_v21  ;;  %v168_v19 = vld [vmem:[#allocation2 + $0x378] sm:$0xff] }
  0x74   :  { %1359 = vmatpush1.bf16.msra.mxu0 %v1884_v26  ;;  %1441 = vmatpush1.bf16.msra.mxu1 %v1886_v27  ;;  %v1755_v26 = vcombine.high %v108_v20, %v112_v21  ;;  %v115_v27 = vld [vmem:[#allocation2 + $0x1d0] sm:$0xff] }
  0x75   :  { %1360 = vmatprep.subr.bf16.mxu0 %v1893_v28  ;;  %1442 = vmatprep.subr.bf16.mxu1 %v1895_v29  ;;  %v119_v28 = vld [vmem:[#allocation2 + $0x1f0] sm:$0xff]  ;;  %v116_v29 = vld [vmem:[#allocation2 + $0x1d8] sm:$0xff] }
  0x76   :  { %v1761_v33 = vcombine.high %v115_v27, %v119_v28  ;;  %v1760_v39 = vcombine.low %v115_v27, %v119_v28  ;;  %v1762_v41 = vcombine.low %v116_v29, %v120_v30  ;;  %v176_v27 = vld [vmem:[#allocation2 + $0x3b8] sm:$0xff] }
  0x78   :  { %1361 = vmatpush1.bf16.msra.mxu0 %v1892_v35  ;;  %1443 = vmatpush1.bf16.msra.mxu1 %v1894_v36  ;;  %v1763_v35 = vcombine.high %v116_v29, %v120_v30  ;;  %v123_v36 = vld [vmem:[#allocation2 + $0x210] sm:$0xff] }
  0x79   :  { %1467 = vmatprep.subr.bf16.mxu0 %v1705_v63  ;;  %1549 = vmatprep.subr.bf16.mxu1 %v1707_v37  ;;  %v127_v63 = vld [vmem:[#allocation2 + $0x230] sm:$0xff]  ;;  %v124_v37 = vld [vmem:[#allocation2 + $0x218] sm:$0xff] }
  0x7a   :  { %v1769_v42 = vcombine.high %v123_v36, %v127_v63  ;;  %v1768_v49 = vcombine.low %v123_v36, %v127_v63  ;;  %v1770_v50 = vcombine.low %v124_v37, %v128_v38  ;;  %v184_v36 = vld [vmem:[#allocation2 + $0x3f8] sm:$0xff] }
  0x7b   :  { %1377 = vmatmul.mubr.bf16.vlgmr.msra.gmra.mrb[0].mxu0 %v2060_v40  ;;  %1459 = vmatmul.mubr.bf16.vlgmr.msra.gmra.mrb[0].mxu1 %v2060_v40 }
  0x7c   :  { %1468 = vmatpush1.bf16.msra.mxu0 %v1704_v43  ;;  %1550 = vmatpush1.bf16.msra.mxu1 %v1706_v45  ;;  %v1771_v43 = vcombine.high %v124_v37, %v128_v38  ;;  %v131_v45 = vld [vmem:[#allocation2 + $0x250] sm:$0xff] }
  0x7d   :  { %1469 = vmatprep.subr.bf16.mxu0 %v1713_v46  ;;  %1551 = vmatprep.subr.bf16.mxu1 %v1715_v47  ;;  %v135_v46 = vld [vmem:[#allocation2 + $0x270] sm:$0xff]  ;;  %v132_v47 = vld [vmem:[#allocation2 + $0x258] sm:$0xff] }
  0x7e   :  { %1499 = vmatprep.mubr.bf16.mxu0 %v2035_v9  ;;  %1581 = vmatprep.mubr.bf16.mxu1 %v2035_v9  ;;  %v1739_v9 = vcombine.high %v92_v4, %v96_v5  ;;  %v1777_v51 = vcombine.high %v131_v45, %v135_v46  ;;  %v1776_v57 = vcombine.low %v131_v45, %v135_v46  ;;  %v192_v45 = vld [vmem:[#allocation2 + $0x438] sm:$0xff] }
  0x7f   :  { %v1778_v58 = vcombine.low %v132_v47, %v136_v48 }
  0x80   :  { %1470 = vmatpush1.bf16.msra.mxu0 %v1712_v16  ;;  %1552 = vmatpush1.bf16.msra.mxu1 %v1714_v52  ;;  %v1779_v16 = vcombine.high %v132_v47, %v136_v48  ;;  %v139_v52 = vld [vmem:[#allocation2 + $0x290] sm:$0xff] }
  0x81   :  { %1471 = vmatprep.subr.bf16.mxu0 %v1721_v54  ;;  %1553 = vmatprep.subr.bf16.mxu1 %v1723_v55  ;;  %v143_v54 = vld [vmem:[#allocation2 + $0x2b0] sm:$0xff]  ;;  %v140_v55 = vld [vmem:[#allocation2 + $0x298] sm:$0xff] }
  0x82   :  { %v1785_v60 = vcombine.high %v139_v52, %v143_v54  ;;  %v1784_v3 = vcombine.low %v139_v52, %v143_v54  ;;  %v1786_v4 = vcombine.low %v140_v55, %v144_v56  ;;  %v200_v52 = vld [vmem:[#allocation2 + $0x478] sm:$0xff] }
  0x84   :  { %1472 = vmatpush1.bf16.msra.mxu0 %v1720_v61  ;;  %1554 = vmatpush1.bf16.msra.mxu1 %v1722_v62  ;;  %v1787_v61 = vcombine.high %v140_v55, %v144_v56  ;;  %v147_v62 = vld [vmem:[#allocation2 + $0x2d0] sm:$0xff] }
  0x85   :  { %1473 = vmatprep.subr.bf16.mxu0 %v1729_v0  ;;  %1555 = vmatprep.subr.bf16.mxu1 %v1731_v1  ;;  %v151_v0 = vld [vmem:[#allocation2 + $0x2f0] sm:$0xff]  ;;  %v148_v1 = vld [vmem:[#allocation2 + $0x2d8] sm:$0xff] }
  0x86   :  { %v1793_v5 = vcombine.high %v147_v62, %v151_v0  ;;  %v1792_v11 = vcombine.low %v147_v62, %v151_v0  ;;  %v1794_v12 = vcombine.low %v148_v1, %v152_v2  ;;  %v208_v62 = vld [vmem:[#allocation2 + $0x4b8] sm:$0xff] }
  0x88   :  { %1474 = vmatpush1.bf16.msra.mxu0 %v1728_v6  ;;  %1556 = vmatpush1.bf16.msra.mxu1 %v1730_v7  ;;  %v1795_v6 = vcombine.high %v148_v1, %v152_v2  ;;  %v155_v7 = vld [vmem:[#allocation2 + $0x310] sm:$0xff] }
  0x89   :  { %1475 = vmatprep.subr.bf16.mxu0 %v1737_v8  ;;  %1557 = vmatprep.subr.bf16.mxu1 %v1739_v9  ;;  %v159_v8 = vld [vmem:[#allocation2 + $0x330] sm:$0xff]  ;;  %v156_v9 = vld [vmem:[#allocation2 + $0x318] sm:$0xff] }
  0x8a   :  { %v1801_v13 = vcombine.high %v155_v7, %v159_v8  ;;  %v1800_v59 = vcombine.low %v155_v7, %v159_v8  ;;  %v1802_v20 = vcombine.low %v156_v9, %v160_v10  ;;  %v216_v7 = vld [vmem:[#allocation2 + $0x4f8] sm:$0xff] }
  0x8c   :  { %1476 = vmatpush1.bf16.msra.mxu0 %v1736_v14  ;;  %1558 = vmatpush1.bf16.msra.mxu1 %v1738_v15  ;;  %v1803_v14 = vcombine.high %v156_v9, %v160_v10  ;;  %v163_v15 = vld [vmem:[#allocation2 + $0x350] sm:$0xff] }
  0x8d   :  { %1477 = vmatprep.subr.bf16.mxu0 %v1745_v17  ;;  %1559 = vmatprep.subr.bf16.mxu1 %v1747_v18  ;;  %v167_v17 = vld [vmem:[#allocation2 + $0x370] sm:$0xff]  ;;  %v164_v18 = vld [vmem:[#allocation2 + $0x358] sm:$0xff] }
  0x8e   :  { %v1809_v21 = vcombine.high %v163_v15, %v167_v17  ;;  %v1808_v28 = vcombine.low %v163_v15, %v167_v17  ;;  %v1810_v29 = vcombine.low %v164_v18, %v168_v19 }
  0x90   :  { %1478 = vmatpush1.bf16.msra.mxu0 %v1744_v22  ;;  %1560 = vmatpush1.bf16.msra.mxu1 %v1746_v23  ;;  %v1811_v22 = vcombine.high %v164_v18, %v168_v19  ;;  %v171_v23 = vld [vmem:[#allocation2 + $0x390] sm:$0xff] }
  0x91   :  { %1479 = vmatprep.subr.bf16.mxu0 %v1753_v24  ;;  %1561 = vmatprep.subr.bf16.mxu1 %v1755_v26  ;;  %v175_v24 = vld [vmem:[#allocation2 + $0x3b0] sm:$0xff]  ;;  %v172_v26 = vld [vmem:[#allocation2 + $0x398] sm:$0xff] }
  0x92   :  { %v1817_v30 = vcombine.high %v171_v23, %v175_v24  ;;  %v1816_v63 = vcombine.low %v171_v23, %v175_v24  ;;  %v1818_v37 = vcombine.low %v172_v26, %v176_v27  ;;  %v227_v19 = vld [vmem:[#allocation2 + $0x550] sm:$0xff] }
  0x94   :  { %1480 = vmatpush1.bf16.msra.mxu0 %v1752_v31  ;;  %1562 = vmatpush1.bf16.msra.mxu1 %v1754_v32  ;;  %v1819_v31 = vcombine.high %v172_v26, %v176_v27  ;;  %v179_v32 = vld [vmem:[#allocation2 + $0x3d0] sm:$0xff] }
  0x95   :  { %1481 = vmatprep.subr.bf16.mxu0 %v1761_v33  ;;  %1563 = vmatprep.subr.bf16.mxu1 %v1763_v35  ;;  %v183_v33 = vld [vmem:[#allocation2 + $0x3f0] sm:$0xff]  ;;  %v180_v35 = vld [vmem:[#allocation2 + $0x3d8] sm:$0xff] }
  0x96   :  { %v1825_v38 = vcombine.high %v179_v32, %v183_v33  ;;  %v1824_v46 = vcombine.low %v179_v32, %v183_v33  ;;  %v1826_v47 = vcombine.low %v180_v35, %v184_v36  ;;  %v235_v27 = vld [vmem:[#allocation2 + $0x590] sm:$0xff] }
  0x98   :  { %1482 = vmatpush1.bf16.msra.mxu0 %v1760_v39  ;;  %1564 = vmatpush1.bf16.msra.mxu1 %v1762_v41  ;;  %v1827_v39 = vcombine.high %v180_v35, %v184_v36  ;;  %v187_v41 = vld [vmem:[#allocation2 + $0x410] sm:$0xff] }
  0x99   :  { %1483 = vmatprep.subr.bf16.mxu0 %v1769_v42  ;;  %1565 = vmatprep.subr.bf16.mxu1 %v1771_v43  ;;  %v191_v42 = vld [vmem:[#allocation2 + $0x430] sm:$0xff]  ;;  %v188_v43 = vld [vmem:[#allocation2 + $0x418] sm:$0xff] }
  0x9a   :  { %v1833_v48 = vcombine.high %v187_v41, %v191_v42  ;;  %v1832_v54 = vcombine.low %v187_v41, %v191_v42  ;;  %v1834_v55 = vcombine.low %v188_v43, %v192_v45  ;;  %v243_v36 = vld [vmem:[#allocation2 + $0x5d0] sm:$0xff] }
  0x9c   :  { %1484 = vmatpush1.bf16.msra.mxu0 %v1768_v49  ;;  %1566 = vmatpush1.bf16.msra.mxu1 %v1770_v50  ;;  %v1835_v49 = vcombine.high %v188_v43, %v192_v45  ;;  %v195_v50 = vld [vmem:[#allocation2 + $0x450] sm:$0xff] }
  0x9d   :  { %1485 = vmatprep.subr.bf16.mxu0 %v1777_v51  ;;  %1567 = vmatprep.subr.bf16.mxu1 %v1779_v16  ;;  %v199_v51 = vld [vmem:[#allocation2 + $0x470] sm:$0xff]  ;;  %v196_v16 = vld [vmem:[#allocation2 + $0x458] sm:$0xff] }
  0x9e   :  { %v1841_v56 = vcombine.high %v195_v50, %v199_v51  ;;  %v1840_v0 = vcombine.low %v195_v50, %v199_v51  ;;  %v1842_v1 = vcombine.low %v196_v16, %v200_v52  ;;  %v251_v45 = vld [vmem:[#allocation2 + $0x610] sm:$0xff] }
  0xa0   :  { %1486 = vmatpush1.bf16.msra.mxu0 %v1776_v57  ;;  %1568 = vmatpush1.bf16.msra.mxu1 %v1778_v58  ;;  %v1843_v57 = vcombine.high %v196_v16, %v200_v52  ;;  %v203_v58 = vld [vmem:[#allocation2 + $0x490] sm:$0xff] }
  0xa1   :  { %1487 = vmatprep.subr.bf16.mxu0 %v1785_v60  ;;  %1569 = vmatprep.subr.bf16.mxu1 %v1787_v61  ;;  %v207_v60 = vld [vmem:[#allocation2 + $0x4b0] sm:$0xff]  ;;  %v204_v61 = vld [vmem:[#allocation2 + $0x498] sm:$0xff] }
  0xa2   :  { %v1849_v2 = vcombine.high %v203_v58, %v207_v60  ;;  %v1848_v8 = vcombine.low %v203_v58, %v207_v60  ;;  %v265_v58 = vsub.s32 1, %v2019_v44  ;;  %v273_v60 = vsub.s32 3, %v2019_v44 }
  0xa4   :  { %1488 = vmatpush1.bf16.msra.mxu0 %v1784_v3  ;;  %1570 = vmatpush1.bf16.msra.mxu1 %v1786_v4  ;;  %v1851_v3 = vcombine.high %v204_v61, %v208_v62  ;;  %v211_v4 = vld [vmem:[#allocation2 + $0x4d0] sm:$0xff] }
  0xa5   :  { %1489 = vmatprep.subr.bf16.mxu0 %v1793_v5  ;;  %1571 = vmatprep.subr.bf16.mxu1 %v1795_v6  ;;  %v215_v5 = vld [vmem:[#allocation2 + $0x4f0] sm:$0xff]  ;;  %v212_v6 = vld [vmem:[#allocation2 + $0x4d8] sm:$0xff] }
  0xa6   :  { %v1857_v9 = vcombine.high %v211_v4, %v215_v5  ;;  %v1859_v10 = vcombine.high %v212_v6, %v216_v7  ;;  %v1856_v15 = vcombine.low %v211_v4, %v215_v5  ;;  %v1858_v17 = vcombine.low %v212_v6, %v216_v7 }
  0xa8   :  { %1490 = vmatpush1.bf16.msra.mxu0 %v1792_v11  ;;  %1572 = vmatpush1.bf16.msra.mxu1 %v1794_v12  ;;  %v219_v11 = vld [vmem:[#allocation2 + $0x510] sm:$0xff] }
  0xa9   :  { %1491 = vmatprep.subr.bf16.mxu0 %v1801_v13  ;;  %1573 = vmatprep.subr.bf16.mxu1 %v1803_v14  ;;  %v223_v12 = vld [vmem:[#allocation2 + $0x530] sm:$0xff]  ;;  %v220_v13 = vld [vmem:[#allocation2 + $0x518] sm:$0xff] }
  0xaa   :  { %v224_v14 = vld [vmem:[#allocation2 + $0x538] sm:$0xff]  ;;  %v1865_v18 = vcombine.high %v219_v11, %v223_v12 }
  0xab   :  { %v1866_v23 = vcombine.low %v220_v13, %v224_v14 }
  0xac   :  { %1492 = vmatpush1.bf16.msra.mxu0 %v1800_v59  ;;  %1574 = vmatpush1.bf16.msra.mxu1 %v1802_v20  ;;  %v231_v59 = vld [vmem:[#allocation2 + $0x570] sm:$0xff]  ;;  %v228_v20 = vld [vmem:[#allocation2 + $0x558] sm:$0xff] }
  0xad   :  { %1493 = vmatprep.subr.bf16.mxu0 %v1809_v21  ;;  %1575 = vmatprep.subr.bf16.mxu1 %v1811_v22  ;;  %v232_v21 = vld [vmem:[#allocation2 + $0x578] sm:$0xff]  ;;  %v1864_v22 = vcombine.low %v219_v11, %v223_v12  ;;  %v1873_v24 = vcombine.high %v227_v19, %v231_v59 }
  0xae   :  { %v1875_v26 = vcombine.high %v228_v20, %v232_v21  ;;  %v1874_v32 = vcombine.low %v228_v20, %v232_v21  ;;  %v277_v20 = vsub.s32 4, %v2019_v44  ;;  %v285_v21 = vsub.s32 6, %v2019_v44 }
  0xb0   :  { %1494 = vmatpush1.bf16.msra.mxu0 %v1808_v28  ;;  %1576 = vmatpush1.bf16.msra.mxu1 %v1810_v29  ;;  %v239_v28 = vld [vmem:[#allocation2 + $0x5b0] sm:$0xff]  ;;  %v236_v29 = vld [vmem:[#allocation2 + $0x598] sm:$0xff] }
  0xb1   :  { %1495 = vmatprep.subr.bf16.mxu0 %v1817_v30  ;;  %1577 = vmatprep.subr.bf16.mxu1 %v1819_v31  ;;  %v240_v30 = vld [vmem:[#allocation2 + $0x5b8] sm:$0xff]  ;;  %v1872_v31 = vcombine.low %v227_v19, %v231_v59  ;;  %v1881_v33 = vcombine.high %v235_v27, %v239_v28 }
  0xb2   :  { %v1883_v35 = vcombine.high %v236_v29, %v240_v30  ;;  %v1882_v41 = vcombine.low %v236_v29, %v240_v30 }
  0xb4   :  { %1496 = vmatpush1.bf16.msra.mxu0 %v1816_v63  ;;  %1578 = vmatpush1.bf16.msra.mxu1 %v1818_v37  ;;  %v247_v63 = vld [vmem:[#allocation2 + $0x5f0] sm:$0xff]  ;;  %v244_v37 = vld [vmem:[#allocation2 + $0x5d8] sm:$0xff] }
  0xb5   :  { %1497 = vmatprep.subr.bf16.mxu0 %v1825_v38  ;;  %1579 = vmatprep.subr.bf16.mxu1 %v1827_v39  ;;  %v248_v38 = vld [vmem:[#allocation2 + $0x5f8] sm:$0xff]  ;;  %v1880_v39 = vcombine.low %v235_v27, %v239_v28  ;;  %v1889_v42 = vcombine.high %v243_v36, %v247_v63 }
  0xb6   :  { %v1891_v43 = vcombine.high %v244_v37, %v248_v38  ;;  %v1890_v50 = vcombine.low %v244_v37, %v248_v38 }
  0xb8   :  { %1498 = vmatpush1.bf16.msra.mxu0 %v1824_v46  ;;  %1580 = vmatpush1.bf16.msra.mxu1 %v1826_v47  ;;  %v255_v46 = vld [vmem:[#allocation2 + $0x630] sm:$0xff]  ;;  %v252_v47 = vld [vmem:[#allocation2 + $0x618] sm:$0xff] }
  0xb9   :  { %1508 = vmatprep.subr.bf16.mxu0 %v1833_v48  ;;  %1590 = vmatprep.subr.bf16.mxu1 %v1835_v49  ;;  %v256_v48 = vld [vmem:[#allocation2 + $0x638] sm:$0xff]  ;;  %v1888_v49 = vcombine.low %v243_v36, %v247_v63  ;;  %v1897_v51 = vcombine.high %v251_v45, %v255_v46  ;;  %v1896_v52 = vcombine.low %v251_v45, %v255_v46 }
  0xba   :  { %v1899_v16 = vcombine.high %v252_v47, %v256_v48 }
  0xbb   :  { %1500 = vmatmul.mubr.bf16.vlgmr.msra.gmra.mrb[4].mxu0 %v2048_v25  ;;  %1582 = vmatmul.mubr.bf16.vlgmr.msra.gmra.mrb[4].mxu1 %v2048_v25  ;;  %v1850_v25 = vcombine.low %v204_v61, %v208_v62 }
  0xbc   :  { %1509 = vmatpush1.bf16.msra.mxu0 %v1832_v54  ;;  %1591 = vmatpush1.bf16.msra.mxu1 %v1834_v55  ;;  %v1898_v54 = vcombine.low %v252_v47, %v256_v48  ;;  %v261_v55 = vsub.s32 0, %v2019_v44 }
  0xbd   :  { %1510 = vmatprep.subr.bf16.mxu0 %v1841_v56  ;;  %1592 = vmatprep.subr.bf16.mxu1 %v1843_v57  ;;  %v257_v56 = vld [vmem:[%s2103_s2] sm:$0xff]  ;;  %v269_v57 = vsub.s32 2, %v2019_v44  ;;  %s1986_s2 = smov [#allocation5]  }
  0xbe   :  { %1902 = vmatprep.mubr.msk.bf16.mxu0 %vm1299_vm0, %v2050_v34  ;;  %1903 = vmatprep.mubr.msk.bf16.mxu1 %vm1299_vm0, %v2050_v34  ;;  %v1867_v34 = vcombine.high %v220_v13, %v224_v14  ;;  %v262_v61 = vrot.slane %v257_v56, %v261_v55  ;;  %s1691_s28 = sshll.u32 %s1986_s2, 4  ;;  %s1692_s28 = int_to_ptr.vmem [resolvable:$true] %s1691_s28 }
  0xbf   :  { %v270_v62 = vrot.slane %v257_v56, %v269_v57  ;;  %s1956_s29 = scalar_lea.vmem %s1692_s28, 256  ;;  %p1961_p9 = scmp.lt.s32.totalorder %s1692_s28, %s1692_s28 }
  0xc0   :  { %1511 = vmatpush1.bf16.msra.mxu0 %v1840_v0  ;;  %1593 = vmatpush1.bf16.msra.mxu1 %v1842_v1  ;;  %v266_v0 = vrot.slane %v257_v56, %v265_v58  ;;  %v274_v1 = vrot.slane %v257_v56, %v273_v60  ;;  %p1957_p8 = scmp.ne.s32.totalorder %s1692_s28, %s1956_s29  ;;  %p1962_p10 = scmp.lt.s32.totalorder %s1956_s29, %s1956_s29 }
  0xc1   :  { %1512 = vmatprep.subr.bf16.mxu0 %v1849_v2  ;;  %1594 = vmatprep.subr.bf16.mxu1 %v1851_v3 }
  0xc2   :  { %p1963_p11 = por %p1962_p10, %p1961_p9 }
  0xc4   :  { %1513 = vmatpush1.bf16.msra.mxu0 %v1848_v8  ;;  %1595 = vmatpush1.bf16.msra.mxu1 %v1850_v25  ;;  %p1964_p12 = pnand %p1963_p11, %p1957_p8 }
  0xc5   :  { %1514 = vmatprep.subr.bf16.mxu0 %v1857_v9  ;;  %1596 = vmatprep.subr.bf16.mxu1 %v1859_v10 }
  0xc8   :  { %1515 = vmatpush1.bf16.msra.mxu0 %v1856_v15  ;;  %1597 = vmatpush1.bf16.msra.mxu1 %v1858_v17 }
  0xc9   :  { %1516 = vmatprep.subr.bf16.mxu0 %v1865_v18  ;;  %1598 = vmatprep.subr.bf16.mxu1 %v1867_v34 }
  0xcc   :  { %1517 = vmatpush1.bf16.msra.mxu0 %v1864_v22  ;;  %1599 = vmatpush1.bf16.msra.mxu1 %v1866_v23  ;;  %v281_v22 = vsub.s32 5, %v2019_v44  ;;  %v289_v23 = vsub.s32 7, %v2019_v44 }
  0xcd   :  { %1518 = vmatprep.subr.bf16.mxu0 %v1873_v24  ;;  %1600 = vmatprep.subr.bf16.mxu1 %v1875_v26  ;;  %v278_v24 = vrot.slane %v257_v56, %v277_v20  ;;  %v286_v26 = vrot.slane %v257_v56, %v285_v21 }
  0xce   :  { %v282_v27 = vrot.slane %v257_v56, %v281_v22  ;;  %v290_v28 = vrot.slane %v257_v56, %v289_v23 }
  0xd0   :  { %1519 = vmatpush1.bf16.msra.mxu0 %v1872_v31  ;;  %1601 = vmatpush1.bf16.msra.mxu1 %v1874_v32 }
  0xd1   :  { %1520 = vmatprep.subr.bf16.mxu0 %v1881_v33  ;;  %1602 = vmatprep.subr.bf16.mxu1 %v1883_v35 }
  0xd4   :  { %1521 = vmatpush1.bf16.msra.mxu0 %v1880_v39  ;;  %1603 = vmatpush1.bf16.msra.mxu1 %v1882_v41 }
  0xd5   :  { %1522 = vmatprep.subr.bf16.mxu0 %v1889_v42  ;;  %1604 = vmatprep.subr.bf16.mxu1 %v1891_v43 }
  0xd8   :  { %1523 = vmatpush1.bf16.msra.mxu0 %v1888_v49  ;;  %1605 = vmatpush1.bf16.msra.mxu1 %v1890_v50 }
  0xd9   :  { %1524 = vmatprep.subr.bf16.mxu0 %v1897_v51  ;;  %1606 = vmatprep.subr.bf16.mxu1 %v1899_v16 }
  0xdc   :  { %1525 = vmatpush1.bf16.msra.mxu0 %v1896_v52  ;;  %1607 = vmatpush1.bf16.msra.mxu1 %v1898_v54 }
  0xdf   :  { %1541 = vmatmul.mubr.bf16.vlgmr.msra.gmra.mrb[4].mxu0 %v2060_v40  ;;  %1623 = vmatmul.mubr.bf16.vlgmr.msra.gmra.mrb[4].mxu1 %v2060_v40 }
 0x14e   :  { %v1378_v2 = vpop.f32.mrb[0].mxu0  ;;  %v1460_v4 = vpop.f32.mrb[0].mxu1 }
 0x14f   :  { %v1904_v3 = vadd.f32 %v1378_v2, %v262_v61  ;;  %v1380_v40 = vpop.f32.mrb[1].mxu0  ;;  %v1906_v5 = vadd.f32 %v1460_v4, %v270_v62  ;;  %v1462_v7 = vpop.f32.mrb[1].mxu1 }
 0x150   :  { %v1905_v6 = vadd.f32 %v1380_v40, %v266_v0  ;;  %v1382_v8 = vpop.f32.mrb[2].mxu0  ;;  %v1907_v9 = vadd.f32 %v1462_v7, %v274_v1  ;;  %v1464_v10 = vpop.f32.mrb[2].mxu1 }
 0x151   :  { %v1631_v25 = vmax.f32 %v1904_v3, 0.0  ;;  %v1383_v11 = vpop.f32.mrb[3].mxu0  ;;  %v1633_v12 = vmax.f32 %v1906_v5, 0.0  ;;  %v1465_v14 = vpop.f32.mrb[3].mxu1 }
 0x152   :  { %v1632_v13 = vmax.f32 %v1905_v6, 0.0  ;;  %v1634_v15 = vmax.f32 %v1907_v9, 0.0 }
 0x154   :  { %v1647_v17 = vcombine.low %v1631_v25, %v1632_v13  ;;  %v1648_v18 = vcombine.low %v1633_v12, %v1634_v15 }
 0x156   :  { %v1655_v34 = vrot.slane %v1647_v17, %v2022_v53  ;;  %v1662_v19 = vrot.slane %v1648_v18, %v2022_v53 }
 0x158   :  { %v1663_v59 = vcombine.low %v1655_v34, %v1662_v19 }
 0x15a   :  { %1683 = vst [vmem:[#allocation5] sm:$0xff] %v1663_v59 }
 0x1b2   :  { %v1542_v29 = vpop.f32.mrb[4].mxu0  ;;  %v1624_v31 = vpop.f32.mrb[4].mxu1 }
 0x1b3   :  { %v1908_v30 = vadd.f32 %v1542_v29, %v278_v24  ;;  %v1544_v32 = vpop.f32.mrb[5].mxu0  ;;  %v1910_v33 = vadd.f32 %v1624_v31, %v286_v26  ;;  %v1626_v36 = vpop.f32.mrb[5].mxu1 }
 0x1b4   :  { %v1909_v35 = vadd.f32 %v1544_v32, %v282_v27  ;;  %v1546_v63 = vpop.f32.mrb[6].mxu0  ;;  %v1911_v38 = vadd.f32 %v1626_v36, %v290_v28  ;;  %v1628_v39 = vpop.f32.mrb[6].mxu1 }
 0x1b5   :  { %v1635_v37 = vmax.f32 %v1908_v30, 0.0  ;;  %v1547_v41 = vpop.f32.mrb[7].mxu0  ;;  %v1637_v42 = vmax.f32 %v1910_v33, 0.0  ;;  %v1629_v45 = vpop.f32.mrb[7].mxu1 }
 0x1b6   :  { %v1636_v43 = vmax.f32 %v1909_v35, 0.0  ;;  %v1638_v44 = vmax.f32 %v1911_v38, 0.0 }
 0x1b8   :  { %v1664_v46 = vcombine.low %v1635_v37, %v1636_v43  ;;  %v1665_v47 = vcombine.low %v1637_v42, %v1638_v44 }
 0x1ba   :  { %v1672_v48 = vrot.slane %v1664_v46, %v2022_v53  ;;  %v1679_v49 = vrot.slane %v1665_v47, %v2022_v53 }
 0x1bc   :  { %v1680_v50 = vcombine.low %v1672_v48, %v1679_v49 }
 0x1be   :  { %1684 = vst [vmem:[#allocation5 + $0x8] sm:$0xff] %v1680_v50 }
 0x1bf   :  { %1967 = shalt.err (!%p1964_p12)
}
 0x1c0   :  { %s1968_s5 = scalar_lea.hbm %s2104_s3, 256 }
 0x1c1   :  { %p1969_p13 = scmp.ne.s32.totalorder %s2104_s3, %s1968_s5  ;;  %p1972_p0 = scmp.lt.u32.totalorder %s1968_s5, %s2104_s3 }
 0x1c3   :  { %p1974_p1 = pnand %p1972_p0, %p1969_p13 }
 0x1c5   :  { %1977 = shalt.err (!%p1974_p1)
}
 0x1c6   :  { %1694 = dma.vmem_to_hbm [thread:$0]  %s1692_s28, 256, %s2104_s3, [#allocation4]  }
 0x1c7   :  { %1980 = dma.done.wait [#allocation4], 256  }
 0x1c8   :  { %1981 = vsyncadd [#allocation4], 4294967040 }
 0x1c9   :  { %1698 = vsyncpa [#allocation3], 1 }
 0x1ca   :  { %1699 = vsyncpa [#allocation4], 1 }

</bundles_post_ra>
